<compile_context>
chip_gen: v7x
topology: tpu7x:2x2x1
jax: 0.10.0
libtpu: 0.0.40
codegen_flags: <defaults>
</compile_context>

<pallas_src>
import functools

import jax
import jax.numpy as jnp
from jax import lax
from jax.experimental import pallas as pl
from jax.experimental.pallas import tpu as pltpu


def _blurpool_kernel(xm_ref, xh_ref, o_ref):
    """One (batch, H-tile) step of the stride-2 3x3 blur-pool.

    xm_ref: (1, tHo, 2, Wq, 2C)  padded rows [2*ho0, 2*ho0 + 2*tHo), factored as
            (row-pair, row-parity) x (col-pair merged with channels: [even-col C | odd-col C])
    xh_ref: (1, 1, 1, Wq, 2C)    halo: padded row 2*(ho0 + tHo), even parity
    o_ref : (1, tHo, Wo, C)
    """
    _, tho, wo, c = o_ref.shape

    xm = xm_ref[...].astype(jnp.float32)
    xh = xh_ref[...].astype(jnp.float32)

    def hblur(a):
        # a: (..., Wq, 2C) -> (..., Wo, C):  row[2wo] + 2*row[2wo+1] + row[2wo+2]
        return (a[..., 0:wo, 0:c]
                + 2.0 * a[..., 0:wo, c:2 * c]
                + a[..., 1:wo + 1, 0:c])

    h_even = hblur(xm[0, :, 0])   # (tHo, Wo, C)  padded rows 2*ho
    h_odd = hblur(xm[0, :, 1])    # (tHo, Wo, C)  padded rows 2*ho + 1
    h_halo = hblur(xh[0, :, 0])   # (1,   Wo, C)  padded row  2*(ho0 + tHo)

    if tho > 1:
        h_next = jnp.concatenate([h_even[1:], h_halo], axis=0)   # padded rows 2*ho + 2
    else:
        h_next = h_halo

    out = (h_even + 2.0 * h_odd + h_next) * (1.0 / 16.0)
    o_ref[...] = out[None].astype(o_ref.dtype)


def _pick_tile_rows(ho, per_row_bytes, budget_bytes, max_tile_rows=None):
    """Largest divisor of `ho` whose block fits the per-step VMEM budget."""
    target = max(1, int(budget_bytes) // max(int(per_row_bytes), 1))
    if max_tile_rows is not None:
        target = min(target, int(max_tile_rows))
    target = max(1, min(target, ho))
    for d in range(target, 0, -1):
        if ho % d == 0:
            return d
    return 1


def anti_alias_downsample_nhwc(x_nhwc, *, max_tile_rows=None):
    """Blur-pool (reflect pad 1, [1,2,1]⊗[1,2,1]/16, stride 2) on an NHWC tensor."""
    N, H, W, C = x_nhwc.shape
    assert H >= 2 and W >= 2, "reflect padding of 1 requires spatial dims >= 2"
    Ho = (H - 1) // 2 + 1
    Wo = (W - 1) // 2 + 1
    Hq, Wq = Ho + 1, Wo + 1          # padded (and evened) spatial pair counts

    # Reflect pad by 1 (matches F.pad(..., 'reflect')); round padded dims up to even.
    xp = jnp.pad(x_nhwc, ((0, 0), (1, 1), (1, 1), (0, 0)), mode="reflect")
    pad_h = 2 * Hq - (H + 2)
    pad_w = 2 * Wq - (W + 2)
    if pad_h or pad_w:
        # extra zero row/col is never read by the kernel (only needed to make dims even)
        xp = jnp.pad(xp, ((0, 0), (0, pad_h), (0, pad_w), (0, 0)))

    # Metadata-only reshape: H -> (Hq, 2), W-parity merged into lanes -> (Wq, 2C).
    xr = xp.reshape(N, Hq, 2, Wq, 2 * C)

    isz = jnp.dtype(x_nhwc.dtype).itemsize
    try:
        vmem_cap = int(getattr(pltpu.get_tpu_info(), "vmem_capacity_bytes", 64 * 2**20))
    except Exception:
        vmem_cap = 64 * 2**20
    # Per-step (single-copy) in+out budget; double-buffering stays well under scoped VMEM
    # on every generation (v7x: 64 MiB physical).
    budget = min(8 * 2**20, max(1 * 2**20, vmem_cap // 16))
    per_row_bytes = (4 * Wq + Wo) * C * isz
    t_ho = _pick_tile_rows(Ho, per_row_bytes, budget, max_tile_rows)

    in_main = pl.BlockSpec((1, t_ho, 2, Wq, 2 * C), lambda n, h: (n, h, 0, 0, 0))
    in_halo = pl.BlockSpec((1, 1, 1, Wq, 2 * C),
                           lambda n, h: (n, (h + 1) * t_ho, 0, 0, 0))
    out_spec = pl.BlockSpec((1, t_ho, Wo, C), lambda n, h: (n, h, 0, 0))

    block_bytes = ((t_ho * 2 * Wq * 2 * C + Wq * 2 * C) + t_ho * Wo * C) * isz
    vmem_limit = int(min(48 * 2**20, max(16 * 2**20, 4 * block_bytes)))

    out_nhwc = pl.pallas_call(
        _blurpool_kernel,
        out_shape=jax.ShapeDtypeStruct((N, Ho, Wo, C), x_nhwc.dtype),
        grid=(N, Ho // t_ho),
        in_specs=[in_main, in_halo],
        out_specs=out_spec,
        compiler_params=pltpu.CompilerParams(
            dimension_semantics=("parallel", "parallel"),
            vmem_limit_bytes=vmem_limit,
        ),
    )(xr, xr)   # same array passed twice: main tile view + 1-row halo view
    return out_nhwc


def anti_alias_downsample(x_nchw, *, filt_size=3, stride=2, max_tile_rows=None):
    """Exact equivalent of AntiAliasDownsampleLayer.forward (NCHW in / NCHW out)."""
    assert filt_size == 3 and stride == 2, "module only supports filt_size=3, stride=2"
    # TODO(synk): the NCHW<->NHWC transposes are left to XLA glue; a model running NHWC
    # end-to-end should call anti_alias_downsample_nhwc directly and skip both transposes.
    x_nhwc = jnp.transpose(x_nchw, (0, 2, 3, 1))
    out_nhwc = anti_alias_downsample_nhwc(x_nhwc, max_tile_rows=max_tile_rows)
    return jnp.transpose(out_nhwc, (0, 3, 1, 2))


def anti_alias_downsample_ref(x_nchw):
    """Direct transcription of the PyTorch Downsample.forward (pure JAX, for checking)."""
    N, C, H, W = x_nchw.shape
    a = jnp.array([1.0, 2.0, 1.0], dtype=jnp.float32)
    filt = a[:, None] * a[None, :]
    filt = filt / jnp.sum(filt)
    w = jnp.broadcast_to(filt, (C, 1, 3, 3))
    xp = jnp.pad(x_nchw.astype(jnp.float32), ((0, 0), (0, 0), (1, 1), (1, 1)),
                 mode="reflect")
    out = lax.conv_general_dilated(
        xp, w, window_strides=(2, 2), padding="VALID",
        dimension_numbers=("NCHW", "OIHW", "NCHW"),
        feature_group_count=C)
    return out.astype(x_nchw.dtype)


if __name__ == "__main__":
    key = jax.random.PRNGKey(0)
    k1, k2, k3 = jax.random.split(key, 3)

    # Test 1: typical small shape (N=2, C=4, 16x16) -> (2, 4, 8, 8)
    x1 = jax.random.normal(k1, (2, 4, 16, 16), dtype=jnp.float32)
    y1 = jax.block_until_ready(anti_alias_downsample(x1))
    r1 = anti_alias_downsample_ref(x1)
    assert y1.shape == (2, 4, 8, 8), y1.shape
    assert jnp.allclose(y1, r1, atol=1e-5, rtol=1e-5), "mismatch vs reference (test 1)"

    # Test 2: odd spatial dims + forced H tiling (exercises the halo path across tiles)
    x2 = jax.random.normal(k2, (1, 6, 15, 13), dtype=jnp.float32)
    y2 = jax.block_until_ready(anti_alias_downsample(x2, max_tile_rows=2))
    r2 = anti_alias_downsample_ref(x2)
    assert y2.shape == (1, 6, 8, 7), y2.shape
    assert jnp.allclose(y2, r2, atol=1e-5, rtol=1e-5), "mismatch vs reference (test 2)"

    # Test 3: lane-aligned channel count (C=128) -> fully dense lane slices/stores
    x3 = jax.random.normal(k3, (1, 128, 16, 16), dtype=jnp.float32)
    y3 = jax.block_until_ready(anti_alias_downsample(x3))
    r3 = anti_alias_downsample_ref(x3)
    assert y3.shape == (1, 128, 8, 8), y3.shape
    assert jnp.allclose(y3, r3, atol=1e-5, rtol=1e-5), "mismatch vs reference (test 3)"

    print("KERNEL_OK")
</pallas_src>

<mosaic_0001>
module attributes {stable_mosaic.version = 11 : i64} {
  func.func @_blurpool_kernel(%arg0: i32, %arg1: i32, %arg2: memref<1x8x2x9x8xf32, #tpu.memory_space<vmem>>, %arg3: memref<1x1x1x9x8xf32, #tpu.memory_space<vmem>>, %arg4: memref<1x8x8x4xf32, #tpu.memory_space<vmem>>) attributes {dimension_semantics = [#tpu.dimension_semantics<parallel>, #tpu.dimension_semantics<parallel>], iteration_bounds = array<i64: 2, 1>, scalar_prefetch = 0 : i64, scratch_operands = 0 : i64, tpu.core_type = #tpu.core_type<tc>, window_params = [{transform_indices = @transform_0, window_bounds = array<i64: 1, 8, 2, 9, 8>}, {transform_indices = @transform_1, window_bounds = array<i64: 1, 1, 1, 9, 8>}, {transform_indices = @transform_2, window_bounds = array<i64: 1, 8, 8, 4>}]} {
    %c0 = arith.constant 0 : index
    %c0_0 = arith.constant 0 : index
    %c0_1 = arith.constant 0 : index
    %c0_2 = arith.constant 0 : index
    %c0_3 = arith.constant 0 : index
    %0 = vector.load %arg2[%c0, %c0_0, %c0_1, %c0_2, %c0_3] : memref<1x8x2x9x8xf32, #tpu.memory_space<vmem>>, vector<1x8x2x9x8xf32>
    %c0_4 = arith.constant 0 : index
    %c0_5 = arith.constant 0 : index
    %c0_6 = arith.constant 0 : index
    %c0_7 = arith.constant 0 : index
    %c0_8 = arith.constant 0 : index
    %1 = vector.load %arg3[%c0_4, %c0_5, %c0_6, %c0_7, %c0_8] : memref<1x1x1x9x8xf32, #tpu.memory_space<vmem>>, vector<1x1x1x9x8xf32>
    %2 = vector.extract_strided_slice %0 {offsets = [0, 0, 0, 0, 0], sizes = [1, 8, 1, 9, 8], strides = [1, 1, 1, 1, 1]} : vector<1x8x2x9x8xf32> to vector<1x8x1x9x8xf32>
    %3 = vector.shape_cast %2 : vector<1x8x1x9x8xf32> to vector<8x9x8xf32>
    %4 = vector.extract_strided_slice %3 {offsets = [0, 0, 0], sizes = [8, 8, 4], strides = [1, 1, 1]} : vector<8x9x8xf32> to vector<8x8x4xf32>
    %5 = vector.extract_strided_slice %3 {offsets = [0, 0, 4], sizes = [8, 8, 4], strides = [1, 1, 1]} : vector<8x9x8xf32> to vector<8x8x4xf32>
    %cst = arith.constant 2.000000e+00 : f32
    %6 = vector.broadcast %cst : f32 to vector<8x8x4xf32>
    %7 = arith.mulf %6, %5 : vector<8x8x4xf32>
    %8 = arith.addf %4, %7 : vector<8x8x4xf32>
    %9 = vector.extract_strided_slice %3 {offsets = [0, 1, 0], sizes = [8, 8, 4], strides = [1, 1, 1]} : vector<8x9x8xf32> to vector<8x8x4xf32>
    %10 = arith.addf %8, %9 : vector<8x8x4xf32>
    %11 = vector.extract_strided_slice %0 {offsets = [0, 0, 1, 0, 0], sizes = [1, 8, 1, 9, 8], strides = [1, 1, 1, 1, 1]} : vector<1x8x2x9x8xf32> to vector<1x8x1x9x8xf32>
    %12 = vector.shape_cast %11 : vector<1x8x1x9x8xf32> to vector<8x9x8xf32>
    %13 = vector.extract_strided_slice %12 {offsets = [0, 0, 0], sizes = [8, 8, 4], strides = [1, 1, 1]} : vector<8x9x8xf32> to vector<8x8x4xf32>
    %14 = vector.extract_strided_slice %12 {offsets = [0, 0, 4], sizes = [8, 8, 4], strides = [1, 1, 1]} : vector<8x9x8xf32> to vector<8x8x4xf32>
    %cst_9 = arith.constant 2.000000e+00 : f32
    %15 = vector.broadcast %cst_9 : f32 to vector<8x8x4xf32>
    %16 = arith.mulf %15, %14 : vector<8x8x4xf32>
    %17 = arith.addf %13, %16 : vector<8x8x4xf32>
    %18 = vector.extract_strided_slice %12 {offsets = [0, 1, 0], sizes = [8, 8, 4], strides = [1, 1, 1]} : vector<8x9x8xf32> to vector<8x8x4xf32>
    %19 = arith.addf %17, %18 : vector<8x8x4xf32>
    %20 = vector.shape_cast %1 : vector<1x1x1x9x8xf32> to vector<1x9x8xf32>
    %21 = vector.extract_strided_slice %20 {offsets = [0, 0, 0], sizes = [1, 8, 4], strides = [1, 1, 1]} : vector<1x9x8xf32> to vector<1x8x4xf32>
    %22 = vector.extract_strided_slice %20 {offsets = [0, 0, 4], sizes = [1, 8, 4], strides = [1, 1, 1]} : vector<1x9x8xf32> to vector<1x8x4xf32>
    %cst_10 = arith.constant 2.000000e+00 : f32
    %23 = vector.broadcast %cst_10 : f32 to vector<1x8x4xf32>
    %24 = arith.mulf %23, %22 : vector<1x8x4xf32>
    %25 = arith.addf %21, %24 : vector<1x8x4xf32>
    %26 = vector.extract_strided_slice %20 {offsets = [0, 1, 0], sizes = [1, 8, 4], strides = [1, 1, 1]} : vector<1x9x8xf32> to vector<1x8x4xf32>
    %27 = arith.addf %25, %26 : vector<1x8x4xf32>
    %28 = vector.extract_strided_slice %10 {offsets = [1, 0, 0], sizes = [7, 8, 4], strides = [1, 1, 1]} : vector<8x8x4xf32> to vector<7x8x4xf32>
    %29 = tpu.concatenate %28, %27 in 0 : vector<7x8x4xf32>, vector<1x8x4xf32> -> vector<8x8x4xf32>
    %cst_11 = arith.constant 2.000000e+00 : f32
    %30 = vector.broadcast %cst_11 : f32 to vector<8x8x4xf32>
    %31 = arith.mulf %30, %19 : vector<8x8x4xf32>
    %32 = arith.addf %10, %31 : vector<8x8x4xf32>
    %33 = arith.addf %32, %29 : vector<8x8x4xf32>
    %cst_12 = arith.constant 6.250000e-02 : f32
    %34 = vector.broadcast %cst_12 : f32 to vector<8x8x4xf32>
    %35 = arith.mulf %33, %34 : vector<8x8x4xf32>
    %36 = vector.shape_cast %35 : vector<8x8x4xf32> to vector<1x8x8x4xf32>
    %c0_13 = arith.constant 0 : index
    %c0_14 = arith.constant 0 : index
    %c0_15 = arith.constant 0 : index
    %c0_16 = arith.constant 0 : index
    %37 = vector.load %arg4[%c0_13, %c0_14, %c0_15, %c0_16] : memref<1x8x8x4xf32, #tpu.memory_space<vmem>>, vector<1x8x8x4xf32>
    tpu.vector_store %arg4[%c0_13, %c0_14, %c0_15, %c0_16], %36 {strides = array<i32>} : memref<1x8x8x4xf32, #tpu.memory_space<vmem>>, vector<1x8x8x4xf32>,
    return
  }
  func.func @transform_0(%arg0: i32, %arg1: i32) -> (i32, i32, i32, i32, i32) {
    %c0_i32 = arith.constant 0 : i32
    %c0_i32_0 = arith.constant 0 : i32
    %c0_i32_1 = arith.constant 0 : i32
    %c0_i32_2 = arith.constant 0 : i32
    return %arg0, %arg1, %c0_i32, %c0_i32_0, %c0_i32_1 : i32, i32, i32, i32, i32
  }
  func.func @transform_1(%arg0: i32, %arg1: i32) -> (i32, i32, i32, i32, i32) {
    %c1_i32 = arith.constant 1 : i32
    %0 = arith.addi %arg1, %c1_i32 : i32
    %c8_i32 = arith.constant 8 : i32
    %1 = arith.muli %0, %c8_i32 : i32
    %c0_i32 = arith.constant 0 : i32
    %c0_i32_0 = arith.constant 0 : i32
    %c0_i32_1 = arith.constant 0 : i32
    %c0_i32_2 = arith.constant 0 : i32
    return %arg0, %1, %c0_i32, %c0_i32_0, %c0_i32_1 : i32, i32, i32, i32, i32
  }
  func.func @transform_2(%arg0: i32, %arg1: i32) -> (i32, i32, i32, i32) {
    %c0_i32 = arith.constant 0 : i32
    %c0_i32_0 = arith.constant 0 : i32
    %c0_i32_1 = arith.constant 0 : i32
    return %arg0, %arg1, %c0_i32, %c0_i32_0 : i32, i32, i32, i32
  }
}

</mosaic_0001>

<bundles_post_ra>
// kernel: tpu_custom_call.1
= control target key start
LH: loop header
LB: loop body
LE: loop exit
PB: predicated region body
PF: predicated region fallthrough
CT: control target
= control target key end

     0   :  { %s754_s9 = smov 0   ;;  %s756_s10 = smov 0   ;;  %s985_s0 = inlined_call_operand.vmem [shape: f32[2,9,2,9,8], index: 0, kind: input, shape index: {}]   ;;  %s986_s1 = inlined_call_operand.vmem [shape: f32[2,9,2,9,8], index: 1, kind: input, shape index: {}]   ;;  %s987_s2 = inlined_call_operand.vmem [shape: f32[2,8,8,4], index: 2, kind: output, shape index: {}]  }
   0x1   :  { %s758_s11 = smov 0  }
   0x2 LB: > { %s24_s12 = sadd.s32 1, %s732_s10  ;;  %p676_p0 = scmp.ge.s32.totalorder %s736_s11, 1  ;;  %s736_s11 = sphi %s758_s11, %s12_s11   ;;  %s732_s10 = sphi %s756_s10, %s989_s10   ;;  %s728_s9 = sphi %s754_s9, %s988_s9  }
   0x3   : > { %p26_p1 = scmp.ge.s32.totalorder %s24_s12, 2  ;;  %p170_p2 = scmp.lt.s32.totalorder %s736_s11, 3 }
   0x5   : > { %s991_s12 = smov (%p26_p1, %s24_s12), 0  ;;  %p171_p3 = pnand %p676_p0, %p170_p2 }
   0x6   : > { %p225_p4 = scmp.lt.s32.totalorder (!%p171_p3), %s728_s9, 1  ;;  %s738_s17 = smov (!%p171_p3), 124   ;;  %vm362_vm0 = vcmask (!%p171_p3), 1046528   ;;  %vm552_vm1 = vcmask (!%p171_p3), 31744  }
   0x7   : > { %174 = sbr.rel (%p171_p3) target bundleno = 178 (0xb2), region = 28 }
   0xe   : > { %s993_s9 = smov (!%p225_p4, %s728_s9), 1 }
   0xf   : > { %s686_s13 = smul.u32 288, %s993_s9  ;;  %s685_s22 = sshll.u32 %s993_s9, 6 }
  0x10   : > { %s946_s25 = scalar_lea.vmem %s987_s2, %s685_s22 }
  0x11   : > { %s780_s16 = scalar_lea.vmem %s985_s0, %s686_s13  ;;  %s684_s18 = sadd.s32 256, %s686_s13 }
  0x12   : > { %v783_v0 = vld [vmem:[%s780_s16 + $0x50] sm:$0xff]  ;;  %v821_v16 = vld [vmem:[%s780_s16 + $0x20] sm:$0xff]  ;;  %s861_s21 = scalar_lea.vmem %s986_s1, %s684_s18  ;;  %v275_v36 = vld [vmem:[%s780_s16 + $0x58] sm:$0x1] }
  0x13   : > { %v786_v1 = vld [vmem:[%s780_s16 + $0x10] sm:$0xff]  ;;  %v405_v3 = vmul.f32 2.0, %v783_v0  ;;  %v824_v17 = vld [vmem:[%s780_s16] sm:$0xff]  ;;  %v299_v18 = vmul.f32 2.0, %v821_v16  ;;  %v267_v37 = vld [vmem:[%s780_s16 + $0x18] sm:$0x1] }
  0x14   : > { %v789_v2 = vld [vmem:[%s780_s16 + $0x70] sm:$0xff]  ;;  %v403_v4 = vmul.f32 2.0, %v786_v1  ;;  %v298_v19 = vmul.f32 2.0, %v824_v17  ;;  %v831_v20 = vld [vmem:[%s780_s16 + $0x60] sm:$0xff]  ;;  %v473_v38 = vrot.slane %v783_v0, 1  ;;  %v467_v39 = vrot.slane %v786_v1, 1 }
  0x15   : > { %v794_v5 = vld [vmem:[%s780_s16 + $0x30] sm:$0xff]  ;;  %423 = vrot.lane.b32.xlu1 %v405_v3, %s738_s17  ;;  %v406_v6 = vmul.f32 2.0, %v789_v2  ;;  %v834_v21 = vld [vmem:[%s780_s16 + $0x40] sm:$0xff]  ;;  %v301_v22 = vmul.f32 2.0, %v831_v20  ;;  %v279_v40 = vld [vmem:[%s780_s16 + $0x78] sm:$0x1] }
  0x16   : > { %419 = vrot.lane.b32.xlu0 %v403_v4, %s738_s17  ;;  %v404_v7 = vmul.f32 2.0, %v794_v5  ;;  %v801_v8 = vld [vmem:[%s780_s16 + $0xb0] sm:$0xff]  ;;  %v300_v23 = vmul.f32 2.0, %v834_v21  ;;  %v841_v24 = vld [vmem:[%s780_s16 + $0xa0] sm:$0xff]  ;;  %v271_v42 = vld [vmem:[%s780_s16 + $0x38] sm:$0x1] }
  0x17   : > { %v804_v9 = vld [vmem:[%s780_s16 + $0x90] sm:$0xff]  ;;  %v408_v10 = vmul.f32 2.0, %v801_v8  ;;  %v844_v25 = vld [vmem:[%s780_s16 + $0x80] sm:$0xff]  ;;  %v303_v26 = vmul.f32 2.0, %v841_v24  ;;  %v474_v44 = vrot.slane %v275_v36, 1  ;;  %v468_v45 = vrot.slane %v267_v37, 1 }
  0x18   : > { %v407_v11 = vmul.f32 2.0, %v804_v9  ;;  %v811_v12 = vld [vmem:[%s780_s16 + $0xf0] sm:$0xff]  ;;  %v302_v27 = vmul.f32 2.0, %v844_v25  ;;  %v853_v28 = vld [vmem:[%s780_s16 + $0xe0] sm:$0xff]  ;;  %v287_v46 = vld [vmem:[%s780_s16 + $0xb8] sm:$0x1] }
  0x19   : > { %425 = vrot.lane.b32.xlu1 %v406_v6, %s738_s17  ;;  %v814_v13 = vld [vmem:[%s780_s16 + $0xd0] sm:$0xff]  ;;  %v410_v14 = vmul.f32 2.0, %v811_v12  ;;  %v856_v29 = vld [vmem:[%s780_s16 + $0xc0] sm:$0xff]  ;;  %v305_v30 = vmul.f32 2.0, %v853_v28  ;;  %v283_v47 = vld [vmem:[%s780_s16 + $0x98] sm:$0x1]  ;;  %v475_v62 = vsel %vm362_vm0, %v473_v38, %v474_v44  ;;  %v469_v63 = vsel %vm362_vm0, %v467_v39, %v468_v45 }
  0x1a   : > { %421 = vrot.lane.b32.xlu0 %v404_v7, %s738_s17  ;;  %v409_v15 = vmul.f32 2.0, %v814_v13  ;;  %v304_v31 = vmul.f32 2.0, %v856_v29  ;;  %v868_v32 = vld [vmem:[%s861_s21] sm:$0xff]  ;;  %v476_v48 = vrot.slane %v789_v2, 1  ;;  %v470_v49 = vrot.slane %v794_v5, 1 }
  0x1b   : > { %v507_v33 = vmul.f32 2.0, %v868_v32  ;;  %v295_v50 = vld [vmem:[%s780_s16 + $0xf8] sm:$0x1]  ;;  %v477_v51 = vrot.slane %v279_v40, 1  ;;  %v471_v52 = vrot.slane %v271_v42, 1  ;;  %v482_v55 = vrot.slane %v801_v8, 1 }
  0x1c   : > { %v291_v53 = vld [vmem:[%s780_s16 + $0xd8] sm:$0x1]  ;;  %v269_v54 = vld [vmem:[%s780_s16 + $0x28] sm:$0x1]  ;;  %v483_v56 = vrot.slane %v287_v46, 1  ;;  %v479_v58 = vrot.slane %v804_v9, 1 }
  0x1d   : > { %429 = vrot.lane.b32.xlu1 %v408_v10, %s738_s17  ;;  %v480_v59 = vrot.slane %v283_v47, 1  ;;  %v265_v61 = vld [vmem:[%s780_s16 + $0x8] sm:$0x1]  ;;  %v488_v3 = vrot.slane %v811_v12, 1  ;;  %v489_v4 = vrot.slane %v295_v50, 1  ;;  %v485_v10 = vrot.slane %v814_v13, 1 }
  0x1e   : > { %427 = vrot.lane.b32.xlu0 %v407_v11, %s738_s17  ;;  %v277_v6 = vld [vmem:[%s780_s16 + $0x68] sm:$0x1]  ;;  %v486_v11 = vrot.slane %v291_v53, 1  ;;  %v472_v38 = vsel %vm362_vm0, %v470_v49, %v471_v52  ;;  %v375_v52 = vrot.slane %v844_v25, 1 }
  0x1f   : > { %v273_v7 = vld [vmem:[%s780_s16 + $0x48] sm:$0x1]  ;;  %v481_v39 = vsel %vm362_vm0, %v479_v58, %v480_v59  ;;  %v914_v44 = vsel %vm362_vm0, %v488_v3, %v489_v4  ;;  %v384_v58 = vrot.slane %v853_v28, 1 }
  0x20   : > { %v370_v36 = vrot.slane %v273_v7, 1  ;;  %v285_v37 = vld [vmem:[%s780_s16 + $0xa8] sm:$0x1]  ;;  %v917_v45 = vsel %vm362_vm0, %v485_v10, %v486_v11 }
  0x21   : > { %433 = vrot.lane.b32.xlu1 %v410_v14, %s738_s17  ;;  %v366_v14 = vrot.slane %v821_v16, 1  ;;  %v281_v40 = vld [vmem:[%s780_s16 + $0x88] sm:$0x1] }
  0x22   : > { %431 = vrot.lane.b32.xlu0 %v409_v15, %s738_s17  ;;  %v367_v15 = vrot.slane %v269_v54, 1  ;;  %v293_v49 = vld [vmem:[%s780_s16 + $0xe8] sm:$0x1]  ;;  %v376_v53 = vrot.slane %v281_v40, 1 }
  0x23   : > { %v289_v59 = vld [vmem:[%s780_s16 + $0xc8] sm:$0x1]  ;;  %v385_v4 = vrot.slane %v293_v49, 1 }
  0x24   : > { %v368_v46 = vsel %vm362_vm0, %v366_v14, %v367_v15  ;;  %v377_v15 = vsel %vm362_vm0, %v375_v52, %v376_v53 }
  0x25   : > { %316 = vrot.lane.b32.xlu1 %v299_v18, %s738_s17 }
  0x26   : > { %314 = vrot.lane.b32.xlu0 %v298_v19, %s738_s17  ;;  %v478_v19 = vsel %vm362_vm0, %v476_v48, %v477_v51 }
  0x29   : > { %320 = vrot.lane.b32.xlu1 %v301_v22, %s738_s17  ;;  %v363_v22 = vrot.slane %v824_v17, 1 }
  0x2a   : > { %318 = vrot.lane.b32.xlu0 %v300_v23, %s738_s17  ;;  %v364_v23 = vrot.slane %v265_v61, 1 }
  0x2c   : > { %v365_v48 = vsel %vm362_vm0, %v363_v22, %v364_v23 }
  0x2d   : > { %324 = vrot.lane.b32.xlu1 %v303_v26, %s738_s17 }
  0x2e   : > { %322 = vrot.lane.b32.xlu0 %v302_v27, %s738_s17 }
  0x31   : > { %328 = vrot.lane.b32.xlu1 %v305_v30, %s738_s17  ;;  %v372_v30 = vrot.slane %v831_v20, 1 }
  0x32   : > { %326 = vrot.lane.b32.xlu0 %v304_v31, %s738_s17  ;;  %v373_v31 = vrot.slane %v277_v6, 1 }
  0x36   : > { %509 = vrot.lane.b32.xlu0 %v507_v33, %s738_s17  ;;  %v369_v33 = vrot.slane %v834_v21, 1 }
  0x87   : > { %v424_v34 = vpop.permute.xlu1 %423 }
  0x88   : > { %v420_v35 = vpop.permute.xlu0 %419  ;;  %v445_v42 = vadd.f32 %v424_v34, %v783_v0  ;;  %v374_v0 = vsel %vm362_vm0, %v372_v30, %v373_v31  ;;  %v371_v34 = vsel %vm362_vm0, %v369_v33, %v370_v36 }
  0x89   : > { %v443_v18 = vadd.f32 %v420_v35, %v786_v1  ;;  %v484_v35 = vsel %vm362_vm0, %v482_v55, %v483_v56 }
  0x8a   : > { %v501_v61 = vadd.f32 %v475_v62, %v445_v42  ;;  %v381_v62 = vrot.slane %v856_v29, 1 }
  0x8b   : > { %v879_v41 = vpop.permute.xlu1 %425  ;;  %v499_v47 = vadd.f32 %v469_v63, %v443_v18  ;;  %v382_v18 = vrot.slane %v289_v59, 1 }
  0x8c   : > { %v422_v43 = vpop.permute.xlu0 %421  ;;  %v446_v63 = vadd.f32 %v879_v41, %v789_v2 }
  0x8d   : > { %v444_v1 = vadd.f32 %v422_v43, %v794_v5  ;;  %v378_v5 = vrot.slane %v841_v24, 1  ;;  %v379_v43 = vrot.slane %v285_v37, 1  ;;  %v520_v6 = vmul.f32 2.0, %v499_v47  ;;  %v297_v37 = vld [vmem:[%s861_s21 + $0x8] sm:$0x1] }
  0x8e   : > { %v502_v23 = vadd.f32 %v478_v19, %v446_v63  ;;  %v383_v19 = vsel %vm362_vm0, %v381_v62, %v382_v18 }
  0x8f   : > { %v430_v57 = vpop.permute.xlu1 %429  ;;  %v500_v54 = vadd.f32 %v472_v38, %v444_v1  ;;  %v380_v11 = vsel %vm362_vm0, %v378_v5, %v379_v43 }
  0x90   : > { %v428_v60 = vpop.permute.xlu0 %427  ;;  %v448_v3 = vadd.f32 %v430_v57, %v801_v8  ;;  %v522_v57 = vmul.f32 2.0, %v501_v61 }
  0x91   : > { %v521_v22 = vmul.f32 2.0, %v500_v54 }
  0x92   : > { %v504_v30 = vadd.f32 %v484_v35, %v448_v3  ;;  %v515_v35 = vrot.slane %v868_v32, 1 }
  0x93   : > { %v902_v26 = vpop.permute.xlu1 %433 }
  0x94   : > { %v432_v27 = vpop.permute.xlu0 %431  ;;  %v525_v5 = vmul.f32 2.0, %v504_v30 }
  0x97   : > { %v317_v50 = vpop.permute.xlu1 %316 }
  0x98   : > { %v315_v51 = vpop.permute.xlu0 %314  ;;  %v339_v55 = vadd.f32 %v317_v50, %v821_v16  ;;  %v447_v16 = vadd.f32 %v428_v60, %v804_v9  ;;  %v386_v9 = vsel %vm362_vm0, %v384_v58, %v385_v4  ;;  %v449_v60 = vadd.f32 %v432_v27, %v814_v13 }
  0x99   : > { %v338_v56 = vadd.f32 %v315_v51, %v824_v17  ;;  %v450_v13 = vadd.f32 %v902_v26, %v811_v12 }
  0x9a   : > { %v396_v7 = vadd.f32 %v368_v46, %v339_v55  ;;  %v503_v38 = vadd.f32 %v481_v39, %v447_v16  ;;  %v523_v39 = vmul.f32 2.0, %v502_v23  ;;  %v505_v43 = vadd.f32 %v917_v45, %v449_v60 }
  0x9b   : > { %v395_v10 = vadd.f32 %v365_v48, %v338_v56  ;;  %v321_v14 = vpop.permute.xlu1 %320  ;;  %v516_v48 = vrot.slane %v297_v37, 1 }
  0x9c   : > { %v319_v17 = vpop.permute.xlu0 %318  ;;  %v341_v8 = vadd.f32 %v321_v14, %v831_v20  ;;  %v529_v31 = vadd.f32 %v521_v22, %v396_v7  ;;  %v524_v51 = vmul.f32 2.0, %v503_v38  ;;  %v526_v56 = vmul.f32 2.0, %v505_v43 }
  0x9d   : > { %v528_v2 = vadd.f32 %v520_v6, %v395_v10  ;;  %v340_v41 = vadd.f32 %v319_v17, %v834_v21  ;;  %v517_v3 = vsel %vm362_vm0, %v515_v35, %v516_v48 }
  0x9e   : > { %v398_v20 = vadd.f32 %v374_v0, %v341_v8 }
  0x9f   : > { %v536_v33 = vadd.f32 %v528_v2, %v396_v7  ;;  %v397_v36 = vadd.f32 %v371_v34, %v340_v41  ;;  %v325_v21 = vpop.permute.xlu1 %324 }
  0xa0   : > { %v323_v1 = vpop.permute.xlu0 %322  ;;  %v343_v46 = vadd.f32 %v325_v21, %v841_v24  ;;  %v531_v12 = vadd.f32 %v523_v39, %v398_v20  ;;  %v506_v24 = vadd.f32 %v914_v44, %v450_v13 }
  0xa1   : > { %v544_v27 = vmul.f32 0.0625, %v536_v33  ;;  %v530_v40 = vadd.f32 %v522_v57, %v397_v36  ;;  %v537_v42 = vadd.f32 %v529_v31, %v397_v36  ;;  %v342_v47 = vadd.f32 %v323_v1, %v844_v25 }
  0xa2   : > { %v400_v26 = vadd.f32 %v380_v11, %v343_v46 }
  0xa3   : > { %553 = vst.msk [vmem:[%s946_s25] sm:$0xff] %vm552_vm1, %v544_v27  ;;  %v538_v49 = vadd.f32 %v530_v40, %v398_v20  ;;  %v545_v50 = vmul.f32 0.0625, %v537_v42  ;;  %v399_v0 = vadd.f32 %v377_v15, %v342_v47  ;;  %v329_v34 = vpop.permute.xlu1 %328 }
  0xa4   : > { %v327_v52 = vpop.permute.xlu0 %326  ;;  %v345_v25 = vadd.f32 %v329_v34, %v853_v28  ;;  %v533_v58 = vadd.f32 %v525_v5, %v400_v26  ;;  %v527_v28 = vmul.f32 2.0, %v506_v24 }
  0xa5   : > { %v546_v53 = vmul.f32 0.0625, %v538_v49  ;;  %554 = vst.msk [vmem:[%s946_s25 + $0x8] sm:$0xff] %vm552_vm1, %v545_v50  ;;  %v344_v45 = vadd.f32 %v327_v52, %v856_v29  ;;  %v532_v54 = vadd.f32 %v524_v51, %v399_v0  ;;  %v539_v55 = vadd.f32 %v531_v12, %v399_v0 }
  0xa6   : > { %v402_v59 = vadd.f32 %v386_v9, %v345_v25 }
  0xa7   : > { %555 = vst.msk [vmem:[%s946_s25 + $0x10] sm:$0xff] %vm552_vm1, %v546_v53  ;;  %v401_v61 = vadd.f32 %v383_v19, %v344_v45  ;;  %v540_v63 = vadd.f32 %v532_v54, %v400_v26  ;;  %v547_v44 = vmul.f32 0.0625, %v539_v55 }
  0xa8   : > { %v510_v4 = vpop.permute.xlu0 %509  ;;  %v535_v11 = vadd.f32 %v527_v28, %v402_v59 }
  0xa9   : > { %v534_v29 = vadd.f32 %v526_v56, %v401_v61  ;;  %v541_v6 = vadd.f32 %v533_v58, %v401_v61  ;;  %v512_v7 = vadd.f32 %v510_v4, %v868_v32  ;;  %v548_v10 = vmul.f32 0.0625, %v540_v63  ;;  %556 = vst.msk [vmem:[%s946_s25 + $0x18] sm:$0xff] %vm552_vm1, %v547_v44 }
  0xab   : > { %v542_v16 = vadd.f32 %v534_v29, %v402_v59  ;;  %v549_v14 = vmul.f32 0.0625, %v541_v6  ;;  %v519_v17 = vadd.f32 %v517_v3, %v512_v7  ;;  %557 = vst.msk [vmem:[%s946_s25 + $0x20] sm:$0xff] %vm552_vm1, %v548_v10 }
  0xad   : > { %v550_v15 = vmul.f32 0.0625, %v542_v16  ;;  %558 = vst.msk [vmem:[%s946_s25 + $0x28] sm:$0xff] %vm552_vm1, %v549_v14  ;;  %v543_v62 = vadd.f32 %v535_v11, %v519_v17 }
  0xaf   : > { %559 = vst.msk [vmem:[%s946_s25 + $0x30] sm:$0xff] %vm552_vm1, %v550_v15  ;;  %v551_v18 = vmul.f32 0.0625, %v543_v62 }
  0xb1   : > { %560 = vst.msk [vmem:[%s946_s25 + $0x38] sm:$0xff] %vm552_vm1, %v551_v18 }
  0xb2 PF: > { %s12_s11 = sadd.s32 1, %s736_s11   ;;  %s988_s9 = smov %s732_s10 }
  0xb3   : > { %p9_p5 = scmp.ge.s32.totalorder %s12_s11, 4   ;;  %s989_s10 = smov %s991_s12 }
  0xb5   :  { %11 = sbr.rel (!%p9_p5) target bundleno = 2 (0x2), region = 61 }

</bundles_post_ra>
